<compile_context>
chip_gen: v7x
topology: tpu7x:2x2x1
jax: 0.10.0
libtpu: 0.0.40
codegen_flags: <defaults>
</compile_context>

<pallas_src>
import functools

import jax
import jax.numpy as jnp
from jax.experimental import pallas as pl
from jax.experimental.pallas import tpu as pltpu

_LANES = 128
_ROW_ALIGN = 16          # block-row granularity (bf16 min tile is (16, 128))
_MAX_BLOCK_ROWS = 2048   # 2048 * 128 * 4B = 1 MiB per input per pipeline buffer


def _cdiv(a: int, b: int) -> int:
    return -(-a // b)


def _round_up(x: int, m: int) -> int:
    return ((x + m - 1) // m) * m


def _tensorcores_per_chip() -> int:
    """Best-effort TensorCores-per-chip (2 on v7x, else 1).  Never raises."""
    try:
        info = pltpu.get_tpu_info()
    except Exception:
        return 1
    for attr in ("tensorcore_count", "num_tensorcores", "num_cores", "core_count"):
        v = getattr(info, attr, None)
        if isinstance(v, int) and v >= 1:
            return max(1, min(2, int(v)))
    return 1


def _as_lane_major(x: jax.Array, n: int) -> jax.Array:
    """(n,) -> (cdiv(n,128), 128) lane-dense view; zero-copy when n % 128 == 0."""
    rows = _cdiv(n, _LANES)
    if n % _LANES == 0:
        return x.reshape(rows, _LANES)          # free reshape, no HBM traffic
    # Unavoidable copy for non-lane-aligned lengths (pad to next 128 multiple).
    # Pad values are masked in-kernel, so zeros are fine.
    return jnp.pad(x, (0, rows * _LANES - n)).reshape(rows, _LANES)


def _jsdiv_kernel(dpos_ref, dneg_ref, out_ref, *,
                  n_pos, n_neg, pos_scale, neg_scale,
                  block_rows, blocks_per_part):
    p = pl.program_id(0)   # TensorCore part ("parallel")
    i = pl.program_id(1)   # sequential reduction over row blocks ("arbitrary")

    # The (8, 128) output block is resident across the sequential `i` axis and
    # doubles as the f32 accumulator (no scratch, no finalize copy).
    @pl.when(i == 0)
    def _init():
        out_ref[...] = jnp.zeros_like(out_ref)

    # Global flat element index of every slot of this tile in the row-major
    # (rows, 128) view of the flattened inputs.
    row0 = (p * blocks_per_part + i) * block_rows
    r = jax.lax.broadcasted_iota(jnp.int32, (block_rows, _LANES), 0)
    c = jax.lax.broadcasted_iota(jnp.int32, (block_rows, _LANES), 1)
    gidx = (row0 + r) * _LANES + c

    # Mask the *inputs* to loss-neutral values before the log so ragged tails,
    # boundary-block overhang and clamped out-of-range blocks (unspecified
    # data, possibly NaN) contribute exactly zero.
    dpos = jnp.where(gidx < n_pos, dpos_ref[...].astype(jnp.float32), 1.0)  # log(1)=0
    dneg = jnp.where(gidx < n_neg, dneg_ref[...].astype(jnp.float32), 0.0)  # log(1-0)=0

    # BCE terms with torch's clamp(log(.), min=-100); the negation and the
    # 0.5/N mean factors are folded into the compile-time scales.
    contrib = (jnp.maximum(jnp.log(dpos), -100.0) * (-pos_scale)
               + jnp.maximum(jnp.log(1.0 - dneg), -100.0) * (-neg_scale))

    # VPU-only partial reduce: fold (block_rows, 128) onto the (8, 128)
    # accumulator with plain vreg adds (no per-tile XLU lane/sublane reduce).
    out_ref[...] += jnp.sum(contrib.reshape(-1, 8, _LANES), axis=0)


def jsdiv_loss(d_pos: jax.Array, d_neg: jax.Array,
               *, max_block_rows: int = _MAX_BLOCK_ROWS,
               num_parts: int | None = None) -> jax.Array:
    """JS-divergence-style BCE loss, matching JSdiv_Loss.forward.

    d_pos, d_neg: probabilities in (0, 1), any shape (flattened).  Kept in
    their own dtype in HBM (bf16 supported); math is f32.  Returns scalar f32.
    """
    d_pos = d_pos.reshape(-1)
    d_neg = d_neg.reshape(-1)
    n_pos, n_neg = int(d_pos.size), int(d_neg.size)
    assert n_pos > 0 and n_neg > 0

    dpos2 = _as_lane_major(d_pos, n_pos)   # (rows_pos, 128)
    dneg2 = _as_lane_major(d_neg, n_neg)   # (rows_neg, 128)
    rows_pos, rows_neg = dpos2.shape[0], dneg2.shape[0]
    rows_max = max(rows_pos, rows_neg)

    # --- grid / tile selection --------------------------------------------
    if num_parts is None:
        tc = _tensorcores_per_chip()
        # Shard across TensorCores only when each part gets >= 2 full blocks.
        num_parts = tc if (tc > 1 and rows_max >= 2 * tc * max_block_rows) else 1
    num_parts = max(1, int(num_parts))

    rows_per_part = _cdiv(rows_max, num_parts)
    block_rows = min(_round_up(max_block_rows, _ROW_ALIGN),
                     _round_up(rows_per_part, _ROW_ALIGN))
    blocks_per_part = _cdiv(rows_per_part, block_rows)

    nblk_pos = _cdiv(rows_pos, block_rows)
    nblk_neg = _cdiv(rows_neg, block_rows)

    kernel = functools.partial(
        _jsdiv_kernel,
        n_pos=n_pos, n_neg=n_neg,
        pos_scale=0.5 / n_pos, neg_scale=0.5 / n_neg,
        block_rows=block_rows, blocks_per_part=blocks_per_part)

    def _in_map(nblk):
        # Clamp so a (part, block) that lies entirely beyond this input never
        # asks for an out-of-range block; that tile is fully masked in-kernel
        # (gidx >= n), so the (re-used) data is irrelevant, and Pallas skips
        # the re-DMA when the block index repeats.
        def index_map(p, i):
            return (jnp.minimum(p * blocks_per_part + i, nblk - 1), 0)
        return index_map

    grid_spec = pltpu.PrefetchScalarGridSpec(
        num_scalar_prefetch=0,
        grid=(num_parts, blocks_per_part),
        in_specs=[
            pl.BlockSpec((block_rows, _LANES), _in_map(nblk_pos)),
            pl.BlockSpec((block_rows, _LANES), _in_map(nblk_neg)),
        ],
        # One lane-dense (8, 128) partial-sum slab per part, resident across
        # the sequential reduction axis (it is the accumulator).
        out_specs=pl.BlockSpec((8, _LANES), lambda p, i: (0, p)),
    )

    elems = (rows_pos + rows_neg) * _LANES
    cost = pl.CostEstimate(
        flops=10 * elems,
        transcendentals=elems,
        bytes_accessed=(int(dpos2.size) * dpos2.dtype.itemsize
                        + int(dneg2.size) * dneg2.dtype.itemsize
                        + num_parts * 8 * _LANES * 4),
    )

    partials = pl.pallas_call(
        kernel,
        out_shape=jax.ShapeDtypeStruct((8, num_parts * _LANES), jnp.float32),
        grid_spec=grid_spec,
        compiler_params=pltpu.CompilerParams(
            dimension_semantics=("parallel", "arbitrary"),
            vmem_limit_bytes=32 * 1024 * 1024,
        ),
        cost_estimate=cost,
    )(dpos2, dneg2)

    # Per-part (8, 128) slabs already carry the 0.5/N scaling; one tiny XLA
    # reduction over (8, num_parts*128) finishes the job (generic in num_parts).
    return jnp.sum(partials)


def _reference(d_pos, d_neg):
    # Pure-JAX reference mirroring torch BCELoss semantics.
    d_pos = d_pos.reshape(-1).astype(jnp.float32)
    d_neg = d_neg.reshape(-1).astype(jnp.float32)
    pos = -jnp.mean(jnp.maximum(jnp.log(d_pos), -100.0))
    neg = -jnp.mean(jnp.maximum(jnp.log(1.0 - d_neg), -100.0))
    return 0.5 * (pos + neg)


if __name__ == "__main__":
    key = jax.random.PRNGKey(0)
    k1, k2 = jax.random.split(key)

    # Discriminator probabilities in (0, 1).  n_pos is lane-aligned (zero-copy
    # reshape path); n_neg is ragged and a different length, exercising the
    # in-kernel tail masking and the clamped per-input index maps.
    n_pos, n_neg = 1024, 600
    d_pos = jax.nn.sigmoid(jax.random.normal(k1, (n_pos,), dtype=jnp.float32))
    d_neg = jax.nn.sigmoid(jax.random.normal(k2, (n_neg,), dtype=jnp.float32))

    ref = jax.block_until_ready(_reference(d_pos, d_neg))

    loss = jax.block_until_ready(jsdiv_loss(d_pos, d_neg))
    assert jnp.allclose(loss, ref, rtol=1e-5, atol=1e-6), (loss, ref)

    # Also exercise the multi-part (per-TensorCore) path and its generic
    # partial-slab combine, including a fully-masked part.
    loss2 = jax.block_until_ready(jsdiv_loss(d_pos, d_neg, num_parts=2))
    assert jnp.allclose(loss2, ref, rtol=1e-5, atol=1e-6), (loss2, ref)

    print("KERNEL_OK")
</pallas_src>

<mosaic_0001>
module attributes {stable_mosaic.version = 11 : i64} {
  func.func @_jsdiv_kernel(%arg0: i32, %arg1: i32, %arg2: memref<16x128xf32, #tpu.memory_space<vmem>>, %arg3: memref<16x128xf32, #tpu.memory_space<vmem>>, %arg4: memref<8x128xf32, #tpu.memory_space<vmem>>) attributes {dimension_semantics = [#tpu.dimension_semantics<parallel>, #tpu.dimension_semantics<arbitrary>], iteration_bounds = array<i64: 1, 1>, scalar_prefetch = 0 : i64, scratch_operands = 0 : i64, tpu.core_type = #tpu.core_type<tc>, window_params = [{transform_indices = @transform_0, window_bounds = array<i64: 16, 128>}, {transform_indices = @transform_1, window_bounds = array<i64: 16, 128>}, {transform_indices = @transform_2, window_bounds = array<i64: 8, 128>}]} {
    %c0_i32 = arith.constant 0 : i32
    %0 = arith.cmpi eq, %arg1, %c0_i32 : i32
    %1 = arith.extui %0 : i1 to i32
    %c0_i32_0 = arith.constant 0 : i32
    %2 = arith.cmpi ne, %1, %c0_i32_0 : i32
    scf.if %2 {
      %cst_15 = arith.constant 0.000000e+00 : f32
      %41 = vector.broadcast %cst_15 : f32 to vector<8x128xf32>
      %c0_16 = arith.constant 0 : index
      %c0_17 = arith.constant 0 : index
      %42 = vector.load %arg4[%c0_16, %c0_17] : memref<8x128xf32, #tpu.memory_space<vmem>>, vector<8x128xf32>
      tpu.vector_store %arg4[%c0_16, %c0_17], %41 {strides = array<i32>} : memref<8x128xf32, #tpu.memory_space<vmem>>, vector<8x128xf32>,
    } else {
    }
    %c1_i32 = arith.constant 1 : i32
    %3 = arith.muli %arg0, %c1_i32 : i32
    %4 = arith.addi %3, %arg1 : i32
    %c16_i32 = arith.constant 16 : i32
    %5 = arith.muli %4, %c16_i32 : i32
    %6 = tpu.iota {dimensions = array<i32: 0>} : vector<16x128xi32>
    %7 = tpu.iota {dimensions = array<i32: 1>} : vector<16x128xi32>
    %8 = vector.broadcast %5 : i32 to vector<16x128xi32>
    %9 = arith.addi %8, %6 : vector<16x128xi32>
    %c128_i32 = arith.constant 128 : i32
    %10 = vector.broadcast %c128_i32 : i32 to vector<16x128xi32>
    %11 = arith.muli %9, %10 : vector<16x128xi32>
    %12 = arith.addi %11, %7 : vector<16x128xi32>
    %c1024_i32 = arith.constant 1024 : i32
    %13 = vector.broadcast %c1024_i32 : i32 to vector<16x128xi32>
    %14 = arith.cmpi slt, %12, %13 : vector<16x128xi32>
    %c0 = arith.constant 0 : index
    %c0_1 = arith.constant 0 : index
    %15 = vector.load %arg2[%c0, %c0_1] : memref<16x128xf32, #tpu.memory_space<vmem>>, vector<16x128xf32>
    %cst = arith.constant 1.000000e+00 : f32
    %16 = vector.broadcast %cst : f32 to vector<16x128xf32>
    %17 = arith.select %14, %15, %16 : vector<16x128xi1>, vector<16x128xf32>
    %c600_i32 = arith.constant 600 : i32
    %18 = vector.broadcast %c600_i32 : i32 to vector<16x128xi32>
    %19 = arith.cmpi slt, %12, %18 : vector<16x128xi32>
    %c0_2 = arith.constant 0 : index
    %c0_3 = arith.constant 0 : index
    %20 = vector.load %arg3[%c0_2, %c0_3] : memref<16x128xf32, #tpu.memory_space<vmem>>, vector<16x128xf32>
    %cst_4 = arith.constant 0.000000e+00 : f32
    %21 = vector.broadcast %cst_4 : f32 to vector<16x128xf32>
    %22 = arith.select %19, %20, %21 : vector<16x128xi1>, vector<16x128xf32>
    %23 = math.log %17 : vector<16x128xf32>
    %cst_5 = arith.constant -1.000000e+02 : f32
    %24 = vector.broadcast %cst_5 : f32 to vector<16x128xf32>
    %25 = arith.maximumf %23, %24 : vector<16x128xf32>
    %cst_6 = arith.constant -4.8828125E-4 : f32
    %26 = vector.broadcast %cst_6 : f32 to vector<16x128xf32>
    %27 = arith.mulf %25, %26 : vector<16x128xf32>
    %cst_7 = arith.constant 1.000000e+00 : f32
    %28 = vector.broadcast %cst_7 : f32 to vector<16x128xf32>
    %29 = arith.subf %28, %22 : vector<16x128xf32>
    %30 = math.log %29 : vector<16x128xf32>
    %cst_8 = arith.constant -1.000000e+02 : f32
    %31 = vector.broadcast %cst_8 : f32 to vector<16x128xf32>
    %32 = arith.maximumf %30, %31 : vector<16x128xf32>
    %cst_9 = arith.constant -8.33333353E-4 : f32
    %33 = vector.broadcast %cst_9 : f32 to vector<16x128xf32>
    %34 = arith.mulf %32, %33 : vector<16x128xf32>
    %35 = arith.addf %27, %34 : vector<16x128xf32>
    %c0_10 = arith.constant 0 : index
    %c0_11 = arith.constant 0 : index
    %36 = vector.load %arg4[%c0_10, %c0_11] : memref<8x128xf32, #tpu.memory_space<vmem>>, vector<8x128xf32>
    %37 = vector.shape_cast %35 : vector<16x128xf32> to vector<2x8x128xf32>
    %cst_12 = arith.constant dense<0.000000e+00> : vector<8x128xf32>
    %38 = vector.multi_reduction <add>, %37, %cst_12 [0] : vector<2x8x128xf32> to vector<8x128xf32>
    %39 = arith.addf %36, %38 : vector<8x128xf32>
    %c0_13 = arith.constant 0 : index
    %c0_14 = arith.constant 0 : index
    %40 = vector.load %arg4[%c0_13, %c0_14] : memref<8x128xf32, #tpu.memory_space<vmem>>, vector<8x128xf32>
    tpu.vector_store %arg4[%c0_13, %c0_14], %39 {strides = array<i32>} : memref<8x128xf32, #tpu.memory_space<vmem>>, vector<8x128xf32>,
    return
  }
  func.func @transform_0(%arg0: i32, %arg1: i32) -> (i32, i32) {
    %c1_i32 = arith.constant 1 : i32
    %0 = arith.muli %arg0, %c1_i32 : i32
    %1 = arith.addi %0, %arg1 : i32
    %c0_i32 = arith.constant 0 : i32
    %2 = arith.minsi %1, %c0_i32 : i32
    %c0_i32_0 = arith.constant 0 : i32
    %c0_i32_1 = arith.constant 0 : i32
    return %2, %c0_i32_0 : i32, i32
  }
  func.func @transform_1(%arg0: i32, %arg1: i32) -> (i32, i32) {
    %c1_i32 = arith.constant 1 : i32
    %0 = arith.muli %arg0, %c1_i32 : i32
    %1 = arith.addi %0, %arg1 : i32
    %c0_i32 = arith.constant 0 : i32
    %2 = arith.minsi %1, %c0_i32 : i32
    %c0_i32_0 = arith.constant 0 : i32
    %c0_i32_1 = arith.constant 0 : i32
    return %2, %c0_i32_0 : i32, i32
  }
  func.func @transform_2(%arg0: i32, %arg1: i32) -> (i32, i32) {
    %c0_i32 = arith.constant 0 : i32
    %c0_i32_0 = arith.constant 0 : i32
    return %c0_i32, %arg0 : i32, i32
  }
}

</mosaic_0001>

<bundles_post_ra>
// kernel: tpu_custom_call.1
= control target key start
LH: loop header
LB: loop body
LE: loop exit
PB: predicated region body
PF: predicated region fallthrough
CT: control target
= control target key end

     0   :  { %7 = vsyncpa [#allocation3], 0  ;;  %s289_s0 = inlined_call_operand.hbm [shape: f32[8,128], index: 0, kind: input, shape index: {}]   ;;  %s290_s1 = inlined_call_operand.hbm [shape: f32[5,128], index: 1, kind: input, shape index: {}]   ;;  %s291_s2 = inlined_call_operand.hbm [shape: f32[8,128], index: 2, kind: output, shape index: {}]  }
   0x1   :  { %8 = vsyncpa [#allocation6], 0 }
   0x2   :  { %9 = vsyncpa [#allocation4], 0 }
   0x3   :  { %20 = vsyncadd [#allocation3], 128  ;;  %s233_s9 = smov [#allocation2]   ;;  %s161_s13 = scalar_lea.hbm %s289_s0, 128 }
   0x4   :  { %s25_s10 = sshll.u32 %s233_s9, 4  ;;  %p162_p0 = scmp.ne.s32.totalorder %s289_s0, %s161_s13  ;;  %s26_s10 = int_to_ptr.vmem [resolvable:$true] %s25_s10 }
   0x5   :  { %p165_p1 = scmp.lt.u32.totalorder %s161_s13, %s289_s0 }
   0x7   :  { %p167_p2 = pnand %p165_p1, %p162_p0 }
   0x9   :  { %170 = shalt.err (!%p167_p2)
}
   0xa   :  { %s171_s18 = scalar_lea.vmem %s26_s10, 128  ;;  %s175_s19 = scalar_lea.vmem %s26_s10, 256 }
   0xb   :  { %p172_p3 = scmp.ne.s32.totalorder %s26_s10, %s171_s18  ;;  %p176_p4 = scmp.lt.s32.totalorder %s26_s10, %s26_s10 }
   0xc   :  { %p177_p5 = scmp.lt.s32.totalorder %s175_s19, %s171_s18 }
   0xe   :  { %p178_p6 = por %p177_p5, %p176_p4 }
  0x10   :  { %p179_p7 = pnand %p178_p6, %p172_p3 }
  0x12   :  { %182 = shalt.err (!%p179_p7)
}
  0x13   :  { %s234_s20 = smov 128   ;;  %s235_s21 = smov 8  }
  0x14   :  { %31 = dma.hbm_to_vmem [thread:$0]  %s289_s0, 128, %s26_s10, [#allocation3], %s234_s20, %s234_s20, %s235_s21  }
  0x15   :  { %42 = vsyncadd [#allocation6], 128  ;;  %s236_s24 = smov [#allocation5]   ;;  %s183_s28 = scalar_lea.hbm %s290_s1, 128 }
  0x16   :  { %s47_s25 = sshll.u32 %s236_s24, 4  ;;  %p184_p8 = scmp.ne.s32.totalorder %s290_s1, %s183_s28  ;;  %s48_s25 = int_to_ptr.vmem [resolvable:$true] %s47_s25 }
  0x17   :  { %p187_p9 = scmp.lt.u32.totalorder %s183_s28, %s290_s1 }
  0x19   :  { %p189_p10 = pnand %p187_p9, %p184_p8 }
  0x1b   :  { %192 = shalt.err (!%p189_p10)
}
  0x1c   :  { %s193_s5 = scalar_lea.vmem %s48_s25, 128  ;;  %s197_s0 = scalar_lea.vmem %s48_s25, 256 }
  0x1d   :  { %p194_p11 = scmp.ne.s32.totalorder %s48_s25, %s193_s5  ;;  %p198_p12 = scmp.lt.s32.totalorder %s48_s25, %s48_s25 }
  0x1e   :  { %p199_p13 = scmp.lt.s32.totalorder %s197_s0, %s193_s5 }
  0x20   :  { %p200_p0 = por %p199_p13, %p198_p12 }
  0x22   :  { %p201_p1 = pnand %p200_p0, %p194_p11 }
  0x24   :  { %204 = shalt.err (!%p201_p1)
}
  0x25   :  { %53 = dma.hbm_to_vmem [thread:$0]  %s290_s1, 128, %s48_s25, [#allocation6], %s234_s20, %s234_s20, %s235_s21  }
  0x26   :  { %227 = dma.done.wait [#allocation3], 256  }
  0x27   :  { %228 = vsyncadd [#allocation3], 4294967040 }
  0x28   :  { %229 = dma.done.wait [#allocation6], 256  }
  0x29   :  { %230 = vsyncadd [#allocation6], 4294967040  ;;  %v79_v0 = vlaneseq  ;;  %v93_v7 = vld [vmem:[#allocation2] sm:$0xff]  ;;  %v99_v8 = vld [vmem:[#allocation5] sm:$0xff]  ;;  %s237_s1 = smov [#allocation7]  }
  0x2a   :  { %v94_v10 = vld [vmem:[#allocation2 + $0x8] sm:$0xff]  ;;  %v100_v11 = vld [vmem:[#allocation5 + $0x8] sm:$0xff]  ;;  %s133_s8 = sshll.u32 %s237_s1, 4  ;;  %s134_s8 = int_to_ptr.vmem [resolvable:$true] %s133_s8 }
  0x2b   :  { %v80_v1 = vshrl.u32 %v79_v0, 7  ;;  %v83_v2 = vand.u32 127, %v79_v0  ;;  %s205_s9 = scalar_lea.vmem %s134_s8, 128  ;;  %p210_p3 = scmp.lt.s32.totalorder %s134_s8, %s134_s8 }
  0x2c   :  { %p206_p2 = scmp.ne.s32.totalorder %s134_s8, %s205_s9  ;;  %p211_p4 = scmp.lt.s32.totalorder %s205_s9, %s205_s9 }
  0x2d   :  { %v81_v3 = vadd.s32 8, %v80_v1  ;;  %v87_v4 = vmul.u32 128, %v80_v1 }
  0x2e   :  { %p212_p5 = por %p211_p4, %p210_p3 }
  0x2f   :  { %v88_v5 = vmul.u32 128, %v81_v3  ;;  %v89_v6 = vadd.s32 %v87_v4, %v83_v2 }
  0x30   :  { %p213_p6 = pnand %p212_p5, %p206_p2 }
  0x31   :  { %v90_v9 = vadd.s32 %v88_v5, %v83_v2  ;;  %vm91_vm0 = vcmp.lt.s32.totalorder %v89_v6, 1024  ;;  %vm97_vm1 = vcmp.lt.s32.totalorder %v89_v6, 600 }
  0x32   :  { %v95_v12 = vsel %vm91_vm0, %v93_v7, 1.0  ;;  %v101_v13 = vsel %vm97_vm1, %v99_v8, 0.0 }
  0x33   :  { %vm92_vm2 = vcmp.lt.s32.totalorder %v90_v9, 1024  ;;  %vm98_vm3 = vcmp.lt.s32.totalorder %v90_v9, 600  ;;  %153 = vlog2.f32 %v95_v12  ;;  %v111_v14 = vsub.f32 1.0, %v101_v13 }
  0x34   :  { %v96_v15 = vsel %vm92_vm2, %v94_v10, 1.0  ;;  %v102_v16 = vsel %vm98_vm3, %v100_v11, 0.0 }
  0x35   :  { %155 = vlog2.f32 %v96_v15  ;;  %v112_v17 = vsub.f32 1.0, %v102_v16 }
  0x36   :  { %157 = vlog2.f32 %v111_v14 }
  0x37   :  { %159 = vlog2.f32 %v112_v17 }
  0x3d   :  { %v154_v18 = vpop.eup %153 }
  0x3e   :  { %v104_v19 = vmul.f32 0.6931472, %v154_v18 }
  0x3f   :  { %v156_v20 = vpop.eup %155 }
  0x40   :  { %v158_v21 = vpop.eup %157  ;;  %v106_v22 = vmul.f32 0.6931472, %v156_v20  ;;  %v107_v23 = vmax.f32 %v104_v19, -100.0 }
  0x41   :  { %v160_v24 = vpop.eup %159  ;;  %v114_v25 = vmul.f32 0.6931472, %v158_v21 }
  0x42   :  { %v108_v26 = vmax.f32 %v106_v22, -100.0  ;;  %v116_v27 = vmul.f32 0.6931472, %v160_v24  ;;  %v109_v28 = vmul.f32 -0.00048828125, %v107_v23 }
  0x43   :  { %v117_v29 = vmax.f32 %v114_v25, -100.0 }
  0x44   :  { %v110_v30 = vmul.f32 -0.00048828125, %v108_v26  ;;  %v118_v31 = vmax.f32 %v116_v27, -100.0 }
  0x45   :  { %v119_v32 = vmul.f32 -0.00083333335, %v117_v29 }
  0x46   :  { %v120_v33 = vmul.f32 -0.00083333335, %v118_v31 }
  0x47   :  { %v121_v34 = vadd.f32 %v119_v32, %v109_v28 }
  0x48   :  { %v122_v35 = vadd.f32 %v120_v33, %v110_v30 }
  0x4a   :  { %v124_v36 = vadd.f32 %v122_v35, %v121_v34 }
  0x4c   :  { %126 = vst [vmem:[#allocation7] sm:$0xff] %v124_v36 }
  0x4d   :  { %216 = shalt.err (!%p213_p6)
}
  0x4e   :  { %s217_s12 = scalar_lea.hbm %s291_s2, 128 }
  0x4f   :  { %p218_p7 = scmp.ne.s32.totalorder %s291_s2, %s217_s12  ;;  %p221_p8 = scmp.lt.u32.totalorder %s217_s12, %s291_s2 }
  0x51   :  { %p223_p9 = pnand %p221_p8, %p218_p7 }
  0x53   :  { %226 = shalt.err (!%p223_p9)
}
  0x54   :  { %136 = dma.vmem_to_hbm [thread:$0]  %s134_s8, 128, %s291_s2, [#allocation4]  }
  0x55   :  { %231 = dma.done.wait [#allocation4], 128  }
  0x56   :  { %232 = vsyncadd [#allocation4], 4294967168 }
  0x57   :  { %140 = vsyncpa [#allocation3], 1 }
  0x58   :  { %141 = vsyncpa [#allocation6], 1 }
  0x59   :  { %142 = vsyncpa [#allocation4], 1 }

</bundles_post_ra>
